<compile_context>
chip_gen: v7x
topology: tpu7x:2x2x1
jax: 0.10.0
libtpu: 0.0.40
codegen_flags: <defaults>
</compile_context>

<pallas_src>
import functools

import jax
import jax.numpy as jnp
from jax.experimental import pallas as pl
from jax.experimental.pallas import tpu as pltpu

BN_EPS = 1e-5


# --------------------------------------------------------------------------
# Kernels
# --------------------------------------------------------------------------
def _fr_stats_kernel(x_ref, w_ref, stats_ref):
    """Pass 1: per-channel sum / sum-of-squares of both conv outputs.

    x_ref:     (2, TM, C_in)  bf16, ReLU already applied, zero-padded rows OK.
    w_ref:     (2, C_in, C_half) bf16.
    stats_ref: (1, 4, C_half) f32 per-shard partial, resident along grid axis 1:
               rows = [sum(h1), sum(h2), sum(h1*h1), sum(h2*h2)].
    """
    @pl.when(pl.program_id(1) == 0)
    def _():
        stats_ref[...] = jnp.zeros_like(stats_ref)

    h1 = jnp.dot(x_ref[0], w_ref[0], preferred_element_type=jnp.float32)
    h2 = jnp.dot(x_ref[1], w_ref[1], preferred_element_type=jnp.float32)

    stacked = jnp.concatenate(
        [jnp.sum(h1, axis=0, keepdims=True),
         jnp.sum(h2, axis=0, keepdims=True),
         jnp.sum(h1 * h1, axis=0, keepdims=True),
         jnp.sum(h2 * h2, axis=0, keepdims=True)], axis=0)      # (4, C_half)
    stats_ref[0] += stacked                                     # single RMW


def _fr_norm_kernel(x_ref, w_ref, p_ref, o_ref):
    """Pass 2: recompute the dots and apply folded BN scale/shift.

    p_ref: (4, C_half) f32 rows = [scale1, shift1, scale2, shift2].
    o_ref: (2, TM, C_half) -- each half starts at lane 0 (lane-dense stores).
    """
    h1 = jnp.dot(x_ref[0], w_ref[0], preferred_element_type=jnp.float32)
    h2 = jnp.dot(x_ref[1], w_ref[1], preferred_element_type=jnp.float32)
    o_ref[0] = (h1 * p_ref[0:1, :] + p_ref[1:2, :]).astype(o_ref.dtype)
    o_ref[1] = (h2 * p_ref[2:3, :] + p_ref[3:4, :]).astype(o_ref.dtype)


def _fr_fused_kernel(x_ref, w_ref, g_ref, b_ref, o_ref, *, inv_m):
    """Resident fast path: conv + global BN stats + normalize in one body.

    x_ref: (2, M_pad, C_in) bf16 (ReLU applied, zero-padded rows contribute 0).
    w_ref: (2, C_in, C_half) bf16.   g_ref/b_ref: (2, C_half) f32.
    o_ref: (2, M_pad, C_half).
    """
    h1 = jnp.dot(x_ref[0], w_ref[0], preferred_element_type=jnp.float32)
    h2 = jnp.dot(x_ref[1], w_ref[1], preferred_element_type=jnp.float32)
    for idx, h in ((0, h1), (1, h2)):
        mean = jnp.sum(h, axis=0, keepdims=True) * inv_m
        ex2 = jnp.sum(h * h, axis=0, keepdims=True) * inv_m
        var = jnp.maximum(ex2 - mean * mean, 0.0)
        scale = g_ref[idx:idx + 1, :] * jax.lax.rsqrt(var + BN_EPS)
        shift = b_ref[idx:idx + 1, :] - mean * scale
        o_ref[idx] = (h * scale + shift).astype(o_ref.dtype)


# --------------------------------------------------------------------------
# Wrapper helpers
# --------------------------------------------------------------------------
def _round_up(a, b):
    return ((a + b - 1) // b) * b


def _vmem_capacity_bytes():
    """Physical VMEM per TensorCore; conservative fallback = v7x's 64 MiB."""
    try:
        cap = getattr(pltpu.get_tpu_info(), "vmem_capacity_bytes", None)
        if cap:
            return int(cap)
    except Exception:
        pass
    return 64 * 2**20


def _vmem_limit(request_bytes, cap_bytes):
    """Clamp the requested scoped-VMEM limit, leaving compiler headroom."""
    hi = min(int(cap_bytes * 3 // 4), 100 * 2**20)
    return int(max(8 * 2**20, min(hi, request_bytes)))


# --------------------------------------------------------------------------
# Public entry point
# --------------------------------------------------------------------------
@functools.partial(jax.jit, static_argnames=("block_m", "fused", "out_dtype"))
def factorized_reduce(x, w1, w2, gamma, beta, *, block_m=1024, fused=None,
                      out_dtype=jnp.float32):
    """x: (N, C_in, H, W) f32 NCHW.  Returns (N, C_out, H//2, W//2) NCHW."""
    N, C_in, H, W = x.shape
    C_half = w1.shape[0]
    C_out = 2 * C_half
    assert H % 2 == 0 and W % 2 == 0, "FactorizedReduce concat needs even H, W"
    Ho, Wo = H // 2, W // 2
    M = N * Ho * Wo
    out_itemsize = jnp.dtype(out_dtype).itemsize

    # ReLU in the wrapper: fuses with the transpose / strided gather / bf16
    # cast, keeps bf16 max off the v5e VPU, and commutes with the bf16 cast.
    x_nhwc = jnp.transpose(jnp.maximum(x, 0.0), (0, 2, 3, 1))
    x1 = x_nhwc[:, 0::2, 0::2, :].reshape(M, C_in)     # conv_1 taps (2i,   2j)
    x2 = x_nhwc[:, 1::2, 1::2, :].reshape(M, C_in)     # conv_2 taps (2i+1, 2j+1)
    x_stk = jnp.stack([x1, x2], axis=0).astype(jnp.bfloat16)   # (2, M, C_in)

    # PyTorch conv weights (C_half, C_in, 1, 1) -> stacked (2, C_in, C_half).
    w_stk = jnp.stack(
        [jnp.transpose(w1.reshape(C_half, C_in), (1, 0)),
         jnp.transpose(w2.reshape(C_half, C_in), (1, 0))],
        axis=0).astype(jnp.bfloat16)

    # ---- tiling: cdiv grid over M, zero-padded tail (never a full-M fallback)
    tm = max(16, min(_round_up(block_m, 16), _round_up(M, 16)))
    n_tiles = (M + tm - 1) // tm
    M_pad = n_tiles * tm
    if M_pad != M:
        x_stk = jnp.pad(x_stk, ((0, 0), (0, M_pad - M), (0, 0)))

    vmem_cap = _vmem_capacity_bytes()
    hi_cap = min(int(vmem_cap * 3 // 4), 100 * 2**20)

    matmul_flops = 2 * 2 * M_pad * C_in * C_half        # two 1x1 convs
    x_bytes = 2 * M_pad * C_in * 2
    w_bytes = 2 * C_in * C_half * 2
    out_bytes = 2 * M_pad * C_half * out_itemsize

    # ---- resident fused fast path (one launch, activations read once) -------
    fused_vmem_est = (2 * x_bytes                  # input, double-buffered
                      + 2 * out_bytes              # output, double-buffered
                      + 2 * 2 * M_pad * C_half * 4 # live f32 h1/h2
                      + 2 * w_bytes + 4 * C_half * 4)
    if fused is None:
        fused = fused_vmem_est <= hi_cap // 2

    g2 = gamma.reshape(2, C_half).astype(jnp.float32)
    b2 = beta.reshape(2, C_half).astype(jnp.float32)

    if fused:
        out_halves = pl.pallas_call(
            functools.partial(_fr_fused_kernel, inv_m=1.0 / M),
            out_shape=jax.ShapeDtypeStruct((2, M_pad, C_half), out_dtype),
            grid_spec=pltpu.PrefetchScalarGridSpec(
                num_scalar_prefetch=0,
                grid=(1,),
                in_specs=[pl.BlockSpec((2, M_pad, C_in), lambda i: (0, 0, 0)),
                          pl.BlockSpec((2, C_in, C_half), lambda i: (0, 0, 0)),
                          pl.BlockSpec((2, C_half), lambda i: (0, 0)),
                          pl.BlockSpec((2, C_half), lambda i: (0, 0))],
                out_specs=pl.BlockSpec((2, M_pad, C_half), lambda i: (0, 0, 0)),
            ),
            compiler_params=pltpu.CompilerParams(
                dimension_semantics=("arbitrary",),
                vmem_limit_bytes=_vmem_limit(fused_vmem_est + (8 << 20),
                                             vmem_cap)),
            cost_estimate=pl.CostEstimate(
                flops=matmul_flops + 8 * M_pad * C_half,
                transcendentals=2 * C_half,
                bytes_accessed=x_bytes + w_bytes + out_bytes + 4 * C_half * 4),
        )(x_stk, w_stk, g2, b2)
    else:
        # ---- tiled two-pass path --------------------------------------------
        # Per-step VMEM budget (double-buffered inputs/outputs + live temps).
        tile_bytes = (2 * (2 * tm * C_in * 2)             # x block x2 bufs
                      + 2 * (2 * C_in * C_half * 2)       # weights x2 bufs
                      + 2 * (2 * tm * C_half * out_itemsize)  # out block x2
                      + 2 * 2 * tm * C_half * 4           # live f32 h1/h2
                      + 8 * 4 * C_half * 4)               # stats/params slabs
        vmem_limit = _vmem_limit(2 * tile_bytes, vmem_cap)

        # Megacore-friendly stats sharding (v7x): leading "parallel" grid axis,
        # per-shard partial stats combined in the wrapper.  Harmless on 1-TC
        # chips.  Only shard when it divides the tile count (no extra padding).
        shards = 2 if (n_tiles % 2 == 0 and n_tiles >= 2) else 1
        steps = n_tiles // shards

        stats_part = pl.pallas_call(
            _fr_stats_kernel,
            out_shape=jax.ShapeDtypeStruct((shards, 4, C_half), jnp.float32),
            grid_spec=pltpu.PrefetchScalarGridSpec(
                num_scalar_prefetch=0,
                grid=(shards, steps),
                in_specs=[
                    pl.BlockSpec((2, tm, C_in),
                                 lambda s, i: (0, s * steps + i, 0)),
                    pl.BlockSpec((2, C_in, C_half), lambda s, i: (0, 0, 0)),
                ],
                out_specs=pl.BlockSpec((1, 4, C_half), lambda s, i: (s, 0, 0)),
            ),
            compiler_params=pltpu.CompilerParams(
                dimension_semantics=("parallel", "arbitrary"),
                vmem_limit_bytes=vmem_limit),
            cost_estimate=pl.CostEstimate(
                flops=matmul_flops + 6 * M_pad * C_half,
                transcendentals=0,
                bytes_accessed=x_bytes + w_bytes + shards * 4 * C_half * 4),
        )(x_stk, w_stk)

        stats = jnp.sum(stats_part, axis=0)                    # (4, C_half)

        # Fold BN (training-mode batch stats, biased variance) into scale/shift.
        inv_m = 1.0 / M                                        # true M (padding-safe)
        mean = stats[0:2, :] * inv_m
        var = jnp.maximum(stats[2:4, :] * inv_m - mean * mean, 0.0)
        scale = g2 * jax.lax.rsqrt(var + BN_EPS)
        shift = b2 - mean * scale
        params = jnp.concatenate(
            [scale[0:1], shift[0:1], scale[1:2], shift[1:2]], axis=0)  # (4,Ch)

        out_halves = pl.pallas_call(
            _fr_norm_kernel,
            out_shape=jax.ShapeDtypeStruct((2, M_pad, C_half), out_dtype),
            grid_spec=pltpu.PrefetchScalarGridSpec(
                num_scalar_prefetch=0,
                grid=(n_tiles,),
                in_specs=[
                    pl.BlockSpec((2, tm, C_in), lambda i: (0, i, 0)),
                    pl.BlockSpec((2, C_in, C_half), lambda i: (0, 0, 0)),
                    pl.BlockSpec((4, C_half), lambda i: (0, 0)),
                ],
                out_specs=pl.BlockSpec((2, tm, C_half), lambda i: (0, i, 0)),
            ),
            compiler_params=pltpu.CompilerParams(
                dimension_semantics=("parallel",),
                vmem_limit_bytes=vmem_limit),
            cost_estimate=pl.CostEstimate(
                flops=matmul_flops + 4 * M_pad * C_half,
                transcendentals=0,
                bytes_accessed=x_bytes + w_bytes + out_bytes + 4 * C_half * 4),
        )(x_stk, w_stk, params)

    # (2, M_pad, C_half) -> drop padding -> NCHW channel concat (half-major).
    out = out_halves[:, :M, :].reshape(2, N, Ho, Wo, C_half)
    out = jnp.transpose(out, (1, 0, 4, 2, 3)).reshape(N, C_out, Ho, Wo)
    return out


# --------------------------------------------------------------------------
# Pure-JAX references
# --------------------------------------------------------------------------
def _reference_f32(x, w1, w2, gamma, beta):
    """Full-f32 mirror of the PyTorch forward (training-mode BN)."""
    xr = jnp.maximum(x, 0.0)
    C_half, C_in = w1.shape[0], w1.shape[1]
    w1m = w1.reshape(C_half, C_in)
    w2m = w2.reshape(C_half, C_in)
    x1 = xr[:, :, 0::2, 0::2]
    x2 = xr[:, :, 1:, 1:][:, :, 0::2, 0::2]
    o1 = jnp.einsum('oc,nchw->nohw', w1m, x1)
    o2 = jnp.einsum('oc,nchw->nohw', w2m, x2)
    out = jnp.concatenate([o1, o2], axis=1)
    mean = jnp.mean(out, axis=(0, 2, 3), keepdims=True)
    var = jnp.mean((out - mean) ** 2, axis=(0, 2, 3), keepdims=True)
    g = gamma.reshape(1, -1, 1, 1)
    b = beta.reshape(1, -1, 1, 1)
    return (out - mean) * jax.lax.rsqrt(var + BN_EPS) * g + b


def _reference_bf16_matmul(x, w1, w2, gamma, beta):
    """Reference mirroring the kernel's bf16 MXU operands + f32 accumulation."""
    C_half, C_in = w1.shape[0], w1.shape[1]
    xr = jnp.maximum(x, 0.0).astype(jnp.bfloat16)
    w1m = w1.reshape(C_half, C_in).astype(jnp.bfloat16)
    w2m = w2.reshape(C_half, C_in).astype(jnp.bfloat16)
    x1 = xr[:, :, 0::2, 0::2]
    x2 = xr[:, :, 1:, 1:][:, :, 0::2, 0::2]
    o1 = jnp.einsum('oc,nchw->nohw', w1m, x1, preferred_element_type=jnp.float32)
    o2 = jnp.einsum('oc,nchw->nohw', w2m, x2, preferred_element_type=jnp.float32)
    out = jnp.concatenate([o1, o2], axis=1)
    mean = jnp.mean(out, axis=(0, 2, 3), keepdims=True)
    var = jnp.mean((out - mean) ** 2, axis=(0, 2, 3), keepdims=True)
    g = gamma.reshape(1, -1, 1, 1)
    b = beta.reshape(1, -1, 1, 1)
    return (out - mean) * jax.lax.rsqrt(var + BN_EPS) * g + b


# --------------------------------------------------------------------------
if __name__ == "__main__":
    key = jax.random.PRNGKey(0)
    k_x, k_w1, k_w2, k_g, k_b = jax.random.split(key, 5)

    N, C_in, H, W = 2, 4, 16, 16
    C_out = 8
    C_half = C_out // 2

    x = jax.random.normal(k_x, (N, C_in, H, W), dtype=jnp.float32)
    # nn.Conv2d(C_in, C_out//2, 1, stride=2, bias=False) weights
    w1 = jax.random.normal(k_w1, (C_half, C_in, 1, 1), dtype=jnp.float32) * 0.5
    w2 = jax.random.normal(k_w2, (C_half, C_in, 1, 1), dtype=jnp.float32) * 0.5
    # affine BN params (near PyTorch defaults gamma=1, beta=0)
    gamma = 1.0 + 0.1 * jax.random.normal(k_g, (C_out,), dtype=jnp.float32)
    beta = 0.1 * jax.random.normal(k_b, (C_out,), dtype=jnp.float32)

    ref_bf16 = jax.block_until_ready(_reference_bf16_matmul(x, w1, w2, gamma, beta))
    ref_f32 = jax.block_until_ready(_reference_f32(x, w1, w2, gamma, beta))

    # M = N*Ho*Wo = 128.  Exercise:
    #  * block_m=64  -> 2 tiles, 2 stats shards (megacore path), no padding
    #  * block_m=48  -> 3 tiles, cdiv tail padding (M_pad=144), 1 shard
    #  * fused=True  -> resident single-launch fast path
    configs = (
        dict(block_m=64, fused=False),
        dict(block_m=48, fused=False),
        dict(fused=True),
    )
    for cfg in configs:
        out = jax.block_until_ready(
            factorized_reduce(x, w1, w2, gamma, beta, **cfg))
        assert out.shape == (N, C_out, H // 2, W // 2), (cfg, out.shape)
        # Tight check vs. the bf16-MXU-numerics reference.
        err = float(jnp.max(jnp.abs(out - ref_bf16)))
        assert jnp.allclose(out, ref_bf16, atol=2e-3, rtol=2e-3), (cfg, err)
        # Looser semantic check vs. the full-f32 module math.
        err32 = float(jnp.max(jnp.abs(out - ref_f32)))
        assert jnp.allclose(out, ref_f32, atol=1e-1, rtol=1e-1), (cfg, err32)

    print("KERNEL_OK")
</pallas_src>

<mosaic_0001>
module attributes {stable_mosaic.version = 11 : i64} {
  func.func @_fr_stats_kernel(%arg0: i32, %arg1: i32, %arg2: memref<2x64x4xbf16, #tpu.memory_space<vmem>>, %arg3: memref<2x4x4xbf16, #tpu.memory_space<vmem>>, %arg4: memref<1x4x4xf32, #tpu.memory_space<vmem>>) attributes {dimension_semantics = [#tpu.dimension_semantics<parallel>, #tpu.dimension_semantics<arbitrary>], iteration_bounds = array<i64: 2, 1>, scalar_prefetch = 0 : i64, scratch_operands = 0 : i64, tpu.core_type = #tpu.core_type<tc>, window_params = [{transform_indices = @transform_0, window_bounds = array<i64: 2, 64, 4>}, {pipeline_mode = #tpu.pipeline_mode<synchronous>, transform_indices = @transform_1, window_bounds = array<i64: 2, 4, 4>}, {transform_indices = @transform_2, window_bounds = array<i64: 1, 4, 4>}]} {
    %c0_i32 = arith.constant 0 : i32
    %0 = arith.cmpi eq, %arg1, %c0_i32 : i32
    %1 = arith.extui %0 : i1 to i32
    %c0_i32_0 = arith.constant 0 : i32
    %2 = arith.cmpi ne, %1, %c0_i32_0 : i32
    scf.if %2 {
      %cst_22 = arith.constant 0.000000e+00 : f32
      %30 = vector.broadcast %cst_22 : f32 to vector<1x4x4xf32>
      %c0_23 = arith.constant 0 : index
      %c0_24 = arith.constant 0 : index
      %c0_25 = arith.constant 0 : index
      %31 = vector.load %arg4[%c0_23, %c0_24, %c0_25] : memref<1x4x4xf32, #tpu.memory_space<vmem>>, vector<1x4x4xf32>
      tpu.vector_store %arg4[%c0_23, %c0_24, %c0_25], %30 {strides = array<i32>} : memref<1x4x4xf32, #tpu.memory_space<vmem>>, vector<1x4x4xf32>,
    } else {
    }
    %c0 = arith.constant 0 : index
    %c0_1 = arith.constant 0 : index
    %c0_2 = arith.constant 0 : index
    %3 = vector.load %arg2[%c0, %c0_1, %c0_2] : memref<2x64x4xbf16, #tpu.memory_space<vmem>>, vector<1x64x4xbf16>
    %4 = vector.shape_cast %3 : vector<1x64x4xbf16> to vector<64x4xbf16>
    %c0_3 = arith.constant 0 : index
    %c0_4 = arith.constant 0 : index
    %c0_5 = arith.constant 0 : index
    %5 = vector.load %arg3[%c0_3, %c0_4, %c0_5] : memref<2x4x4xbf16, #tpu.memory_space<vmem>>, vector<1x4x4xbf16>
    %6 = vector.shape_cast %5 : vector<1x4x4xbf16> to vector<4x4xbf16>
    %cst = arith.constant dense<0.000000e+00> : vector<64x4xf32>
    %7 = tpu.matmul %4, %6, %cst {dimension_numbers = #tpu.dot_dimension_numbers<[1], [0], [0], [1], [0, 0, 1, 1], [], []>} : vector<64x4xbf16>, vector<4x4xbf16>, vector<64x4xf32> -> vector<64x4xf32>
    %c1 = arith.constant 1 : index
    %c0_6 = arith.constant 0 : index
    %c0_7 = arith.constant 0 : index
    %8 = vector.load %arg2[%c1, %c0_6, %c0_7] : memref<2x64x4xbf16, #tpu.memory_space<vmem>>, vector<1x64x4xbf16>
    %9 = vector.shape_cast %8 : vector<1x64x4xbf16> to vector<64x4xbf16>
    %c1_8 = arith.constant 1 : index
    %c0_9 = arith.constant 0 : index
    %c0_10 = arith.constant 0 : index
    %10 = vector.load %arg3[%c1_8, %c0_9, %c0_10] : memref<2x4x4xbf16, #tpu.memory_space<vmem>>, vector<1x4x4xbf16>
    %11 = vector.shape_cast %10 : vector<1x4x4xbf16> to vector<4x4xbf16>
    %cst_11 = arith.constant dense<0.000000e+00> : vector<64x4xf32>
    %12 = tpu.matmul %9, %11, %cst_11 {dimension_numbers = #tpu.dot_dimension_numbers<[1], [0], [0], [1], [0, 0, 1, 1], [], []>} : vector<64x4xbf16>, vector<4x4xbf16>, vector<64x4xf32> -> vector<64x4xf32>
    %cst_12 = arith.constant dense<0.000000e+00> : vector<4xf32>
    %13 = vector.multi_reduction <add>, %7, %cst_12 [0] : vector<64x4xf32> to vector<4xf32>
    %14 = vector.shape_cast %13 : vector<4xf32> to vector<1x4xf32>
    %cst_13 = arith.constant dense<0.000000e+00> : vector<4xf32>
    %15 = vector.multi_reduction <add>, %12, %cst_13 [0] : vector<64x4xf32> to vector<4xf32>
    %16 = vector.shape_cast %15 : vector<4xf32> to vector<1x4xf32>
    %17 = arith.mulf %7, %7 : vector<64x4xf32>
    %cst_14 = arith.constant dense<0.000000e+00> : vector<4xf32>
    %18 = vector.multi_reduction <add>, %17, %cst_14 [0] : vector<64x4xf32> to vector<4xf32>
    %19 = vector.shape_cast %18 : vector<4xf32> to vector<1x4xf32>
    %20 = arith.mulf %12, %12 : vector<64x4xf32>
    %cst_15 = arith.constant dense<0.000000e+00> : vector<4xf32>
    %21 = vector.multi_reduction <add>, %20, %cst_15 [0] : vector<64x4xf32> to vector<4xf32>
    %22 = vector.shape_cast %21 : vector<4xf32> to vector<1x4xf32>
    %23 = tpu.concatenate %14, %16, %19, %22 in 0 : vector<1x4xf32>, vector<1x4xf32>, vector<1x4xf32>, vector<1x4xf32> -> vector<4x4xf32>
    %c0_16 = arith.constant 0 : index
    %c0_17 = arith.constant 0 : index
    %c0_18 = arith.constant 0 : index
    %24 = vector.load %arg4[%c0_16, %c0_17, %c0_18] : memref<1x4x4xf32, #tpu.memory_space<vmem>>, vector<1x4x4xf32>
    %25 = vector.shape_cast %24 : vector<1x4x4xf32> to vector<4x4xf32>
    %26 = arith.addf %25, %23 : vector<4x4xf32>
    %c0_19 = arith.constant 0 : index
    %c0_20 = arith.constant 0 : index
    %c0_21 = arith.constant 0 : index
    %27 = vector.load %arg4[%c0_19, %c0_20, %c0_21] : memref<1x4x4xf32, #tpu.memory_space<vmem>>, vector<1x4x4xf32>
    %28 = vector.shape_cast %27 : vector<1x4x4xf32> to vector<4x4xf32>
    %29 = vector.shape_cast %26 : vector<4x4xf32> to vector<1x4x4xf32>
    tpu.vector_store %arg4[%c0_19, %c0_20, %c0_21], %29 {strides = array<i32>} : memref<1x4x4xf32, #tpu.memory_space<vmem>>, vector<1x4x4xf32>,
    return
  }
  func.func @transform_0(%arg0: i32, %arg1: i32) -> (i32, i32, i32) {
    %c1_i32 = arith.constant 1 : i32
    %0 = arith.muli %arg0, %c1_i32 : i32
    %1 = arith.addi %0, %arg1 : i32
    %c0_i32 = arith.constant 0 : i32
    %c0_i32_0 = arith.constant 0 : i32
    %c0_i32_1 = arith.constant 0 : i32
    return %c0_i32, %1, %c0_i32_0 : i32, i32, i32
  }
  func.func @transform_1(%arg0: i32, %arg1: i32) -> (i32, i32, i32) {
    %c0_i32 = arith.constant 0 : i32
    %c0_i32_0 = arith.constant 0 : i32
    %c0_i32_1 = arith.constant 0 : i32
    %c0_i32_2 = arith.constant 0 : i32
    return %c0_i32, %c0_i32_0, %c0_i32_1 : i32, i32, i32
  }
  func.func @transform_2(%arg0: i32, %arg1: i32) -> (i32, i32, i32) {
    %c0_i32 = arith.constant 0 : i32
    %c0_i32_0 = arith.constant 0 : i32
    %c0_i32_1 = arith.constant 0 : i32
    return %arg0, %c0_i32, %c0_i32_0 : i32, i32, i32
  }
}

module attributes {stable_mosaic.version = 11 : i64} {
  func.func @_fr_norm_kernel(%arg0: i32, %arg1: memref<2x64x4xbf16, #tpu.memory_space<vmem>>, %arg2: memref<2x4x4xbf16, #tpu.memory_space<vmem>>, %arg3: memref<4x4xf32, #tpu.memory_space<vmem>>, %arg4: memref<2x64x4xf32, #tpu.memory_space<vmem>>) attributes {dimension_semantics = [#tpu.dimension_semantics<parallel>], iteration_bounds = array<i64: 2>, scalar_prefetch = 0 : i64, scratch_operands = 0 : i64, tpu.core_type = #tpu.core_type<tc>, window_params = [{transform_indices = @transform_0, window_bounds = array<i64: 2, 64, 4>}, {pipeline_mode = #tpu.pipeline_mode<synchronous>, transform_indices = @transform_1, window_bounds = array<i64: 2, 4, 4>}, {pipeline_mode = #tpu.pipeline_mode<synchronous>, transform_indices = @transform_2, window_bounds = array<i64: 4, 4>}, {transform_indices = @transform_3, window_bounds = array<i64: 2, 64, 4>}]} {
    %c0 = arith.constant 0 : index
    %c0_0 = arith.constant 0 : index
    %c0_1 = arith.constant 0 : index
    %0 = vector.load %arg1[%c0, %c0_0, %c0_1] : memref<2x64x4xbf16, #tpu.memory_space<vmem>>, vector<1x64x4xbf16>
    %1 = vector.shape_cast %0 : vector<1x64x4xbf16> to vector<64x4xbf16>
    %c0_2 = arith.constant 0 : index
    %c0_3 = arith.constant 0 : index
    %c0_4 = arith.constant 0 : index
    %2 = vector.load %arg2[%c0_2, %c0_3, %c0_4] : memref<2x4x4xbf16, #tpu.memory_space<vmem>>, vector<1x4x4xbf16>
    %3 = vector.shape_cast %2 : vector<1x4x4xbf16> to vector<4x4xbf16>
    %cst = arith.constant dense<0.000000e+00> : vector<64x4xf32>
    %4 = tpu.matmul %1, %3, %cst {dimension_numbers = #tpu.dot_dimension_numbers<[1], [0], [0], [1], [0, 0, 1, 1], [], []>} : vector<64x4xbf16>, vector<4x4xbf16>, vector<64x4xf32> -> vector<64x4xf32>
    %c1 = arith.constant 1 : index
    %c0_5 = arith.constant 0 : index
    %c0_6 = arith.constant 0 : index
    %5 = vector.load %arg1[%c1, %c0_5, %c0_6] : memref<2x64x4xbf16, #tpu.memory_space<vmem>>, vector<1x64x4xbf16>
    %6 = vector.shape_cast %5 : vector<1x64x4xbf16> to vector<64x4xbf16>
    %c1_7 = arith.constant 1 : index
    %c0_8 = arith.constant 0 : index
    %c0_9 = arith.constant 0 : index
    %7 = vector.load %arg2[%c1_7, %c0_8, %c0_9] : memref<2x4x4xbf16, #tpu.memory_space<vmem>>, vector<1x4x4xbf16>
    %8 = vector.shape_cast %7 : vector<1x4x4xbf16> to vector<4x4xbf16>
    %cst_10 = arith.constant dense<0.000000e+00> : vector<64x4xf32>
    %9 = tpu.matmul %6, %8, %cst_10 {dimension_numbers = #tpu.dot_dimension_numbers<[1], [0], [0], [1], [0, 0, 1, 1], [], []>} : vector<64x4xbf16>, vector<4x4xbf16>, vector<64x4xf32> -> vector<64x4xf32>
    %c0_11 = arith.constant 0 : index
    %c0_12 = arith.constant 0 : index
    %10 = vector.load %arg3[%c0_11, %c0_12] : memref<4x4xf32, #tpu.memory_space<vmem>>, vector<1x4xf32>
    %11 = vector.broadcast %10 : vector<1x4xf32> to vector<64x4xf32>
    %12 = arith.mulf %4, %11 : vector<64x4xf32>
    %c1_13 = arith.constant 1 : index
    %c0_14 = arith.constant 0 : index
    %13 = vector.load %arg3[%c1_13, %c0_14] : memref<4x4xf32, #tpu.memory_space<vmem>>, vector<1x4xf32>
    %14 = vector.broadcast %13 : vector<1x4xf32> to vector<64x4xf32>
    %15 = arith.addf %12, %14 : vector<64x4xf32>
    %c0_15 = arith.constant 0 : index
    %c0_16 = arith.constant 0 : index
    %c0_17 = arith.constant 0 : index
    %16 = vector.load %arg4[%c0_15, %c0_16, %c0_17] : memref<2x64x4xf32, #tpu.memory_space<vmem>>, vector<1x64x4xf32>
    %17 = vector.shape_cast %16 : vector<1x64x4xf32> to vector<64x4xf32>
    %18 = vector.shape_cast %15 : vector<64x4xf32> to vector<1x64x4xf32>
    tpu.vector_store %arg4[%c0_15, %c0_16, %c0_17], %18 {strides = array<i32>} : memref<2x64x4xf32, #tpu.memory_space<vmem>>, vector<1x64x4xf32>,
    %c2 = arith.constant 2 : index
    %c0_18 = arith.constant 0 : index
    %19 = vector.load %arg3[%c2, %c0_18] : memref<4x4xf32, #tpu.memory_space<vmem>>, vector<1x4xf32>
    %20 = vector.broadcast %19 : vector<1x4xf32> to vector<64x4xf32>
    %21 = arith.mulf %9, %20 : vector<64x4xf32>
    %c3 = arith.constant 3 : index
    %c0_19 = arith.constant 0 : index
    %22 = vector.load %arg3[%c3, %c0_19] : memref<4x4xf32, #tpu.memory_space<vmem>>, vector<1x4xf32>
    %23 = vector.broadcast %22 : vector<1x4xf32> to vector<64x4xf32>
    %24 = arith.addf %21, %23 : vector<64x4xf32>
    %c1_20 = arith.constant 1 : index
    %c0_21 = arith.constant 0 : index
    %c0_22 = arith.constant 0 : index
    %25 = vector.load %arg4[%c1_20, %c0_21, %c0_22] : memref<2x64x4xf32, #tpu.memory_space<vmem>>, vector<1x64x4xf32>
    %26 = vector.shape_cast %25 : vector<1x64x4xf32> to vector<64x4xf32>
    %27 = vector.shape_cast %24 : vector<64x4xf32> to vector<1x64x4xf32>
    tpu.vector_store %arg4[%c1_20, %c0_21, %c0_22], %27 {strides = array<i32>} : memref<2x64x4xf32, #tpu.memory_space<vmem>>, vector<1x64x4xf32>,
    return
  }
  func.func @transform_0(%arg0: i32) -> (i32, i32, i32) {
    %c0_i32 = arith.constant 0 : i32
    %c0_i32_0 = arith.constant 0 : i32
    %c0_i32_1 = arith.constant 0 : i32
    return %c0_i32, %arg0, %c0_i32_0 : i32, i32, i32
  }
  func.func @transform_1(%arg0: i32) -> (i32, i32, i32) {
    %c0_i32 = arith.constant 0 : i32
    %c0_i32_0 = arith.constant 0 : i32
    %c0_i32_1 = arith.constant 0 : i32
    %c0_i32_2 = arith.constant 0 : i32
    return %c0_i32, %c0_i32_0, %c0_i32_1 : i32, i32, i32
  }
  func.func @transform_2(%arg0: i32) -> (i32, i32) {
    %c0_i32 = arith.constant 0 : i32
    %c0_i32_0 = arith.constant 0 : i32
    %c0_i32_1 = arith.constant 0 : i32
    return %c0_i32, %c0_i32_0 : i32, i32
  }
  func.func @transform_3(%arg0: i32) -> (i32, i32, i32) {
    %c0_i32 = arith.constant 0 : i32
    %c0_i32_0 = arith.constant 0 : i32
    %c0_i32_1 = arith.constant 0 : i32
    return %c0_i32, %arg0, %c0_i32_0 : i32, i32, i32
  }
}

</mosaic_0001>

<bundles_post_ra>
// kernel: factorized_reduce.2
= control target key start
LH: loop header
LB: loop body
LE: loop exit
PB: predicated region body
PF: predicated region fallthrough
CT: control target
= control target key end

     0   :  { %s842_s9 = smov 0   ;;  %s844_s10 = smov 0   ;;  %s966_s0 = inlined_call_operand.vmem [shape: bf16[2,128,4], index: 0, kind: input, shape index: {}]   ;;  %s967_s1 = inlined_call_operand.vmem [shape: bf16[2,4,4], index: 1, kind: input, shape index: {}]   ;;  %s968_s2 = inlined_call_operand.vmem [shape: f32[2,4,4], index: 2, kind: output, shape index: {}]  }
   0x1   :  { %s846_s11 = smov 0   ;;  %s848_s12 = smov 0  }
   0x2   :  { %s850_s13 = smov 0  }
   0x3 LB: > { %s24_s14 = sadd.s32 1, %s820_s12  ;;  %p40_p1 = scmp.ne.s32.totalorder %s812_s10, %s808_s9  ;;  %s824_s13 = sphi %s850_s13, %s12_s13   ;;  %s820_s12 = sphi %s848_s12, %s972_s12   ;;  %s816_s11 = sphi %s846_s11, %s971_s11   ;;  %s812_s10 = sphi %s844_s10, %s970_s10   ;;  %s808_s9 = sphi %s842_s9, %s969_s9  }
   0x4   : > { %p26_p0 = scmp.ge.s32.totalorder %s24_s14, 2  ;;  %p41_p2 = scmp.eq.s32.totalorder %s824_s13, 0 }
   0x5   : > { %s33_s16 = sadd.s32 1, %s812_s10  ;;  %p670_p5 = scmp.ge.s32.totalorder %s824_s13, 2 }
   0x6   : > { %s974_s14 = smov (%p26_p0, %s24_s14), 0  ;;  %p42_p3 = por %p41_p2, %p40_p1 }
   0x7   : > { %s30_s15 = ssub.s32 %s820_s12, %s974_s14  ;;  %116 = sbr.rel (%p670_p5) target bundleno = 22 (0x16), region = 20 }
   0x8   : > { %p31_p4 = scmp.eq.s32.totalorder %s30_s15, 0 }
   0xa   : > { %s877_s17 = scalar_select %p31_p4, %s812_s10, %s33_s16  }
   0xe   : > { %119 = sbr.rel (!%p42_p3) target bundleno = 22 (0x16), region = 24  ;;  %s121_s18 = sand.u32 (%p42_p3), 1, %s812_s10  }
   0xf   : > { %s704_s19 = sshll.u32 (%p42_p3), %s820_s12, 5  ;;  %s671_s20 = sshll.u32 (%p42_p3), %s121_s18, 6 }
  0x10   : > { %s127_s23 = scalar_lea.vmem (%p42_p3), %s966_s0, %s704_s19  ;;  %s123_s24 = scalar_lea.vmem (%p42_p3), [#allocation2], %s671_s20 }
  0x11   : > { %v143_v0 = vld [vmem:[%s127_s23] sm:$0xff] (%p42_p3)   ;;  %v147_v1 = vld [vmem:[%s127_s23 + $0x8] sm:$0xff] (%p42_p3)   ;;  %v151_v2 = vld [vmem:[%s127_s23 + $0x10] sm:$0xff] (%p42_p3)  }
  0x12   : > { %144 = vst [vmem:[%s123_s24] sm:$0xff] (%p42_p3), %v143_v0   ;;  %148 = vst [vmem:[%s123_s24 + $0x8] sm:$0xff] (%p42_p3), %v147_v1   ;;  %v155_v3 = vld [vmem:[%s127_s23 + $0x18] sm:$0xff] (%p42_p3)   ;;  %v159_v4 = vld [vmem:[%s127_s23 + $0x40] sm:$0xff] (%p42_p3)  }
  0x13   : > { %152 = vst [vmem:[%s123_s24 + $0x10] sm:$0xff] (%p42_p3), %v151_v2   ;;  %v163_v5 = vld [vmem:[%s127_s23 + $0x48] sm:$0xff] (%p42_p3)   ;;  %156 = vst [vmem:[%s123_s24 + $0x18] sm:$0xff] (%p42_p3), %v155_v3   ;;  %v167_v6 = vld [vmem:[%s127_s23 + $0x50] sm:$0xff] (%p42_p3)  }
  0x14   : > { %160 = vst [vmem:[%s123_s24 + $0x20] sm:$0xff] (%p42_p3), %v159_v4   ;;  %164 = vst [vmem:[%s123_s24 + $0x28] sm:$0xff] (%p42_p3), %v163_v5   ;;  %v171_v7 = vld [vmem:[%s127_s23 + $0x58] sm:$0xff] (%p42_p3)  }
  0x15   : > { %168 = vst [vmem:[%s123_s24 + $0x30] sm:$0xff] %v167_v6   ;;  %172 = vst [vmem:[%s123_s24 + $0x38] sm:$0xff] %v171_v7  }
  0x16 PF: > { %p674_p6 = scmp.ge.s32.totalorder %s824_s13, 1  ;;  %p228_p7 = scmp.lt.s32.totalorder %s824_s13, 3 }
  0x18   : > { %p229_p8 = pnand %p674_p6, %p228_p7 }
  0x19   : > { %v276_v8 = vld [vmem:[%s967_s1] sm:$0x3] (!%p229_p8)  ;;  %vm310_vm0 = vcmask (!%p229_p8), 1041408   ;;  %v693_v9 = vld [vmem:[%s967_s1 + $0x2] sm:$0x3] (!%p229_p8)  ;;  %s235_s29 = sand.u32 (!%p229_p8), 1, %s808_s9  }
  0x1a   : > { %232 = sbr.rel (%p229_p8) target bundleno = 281 (0x119), region = 65  ;;  %735 = vmatprep.subr.msk.bf16.mxu0 (!%p229_p8), %vm310_vm0, %v276_v8  ;;  %736 = vmatprep.subr.msk.bf16.mxu1 (!%p229_p8), %vm310_vm0, %v693_v9  ;;  %v312_v10 = vsel (!%p229_p8), %vm310_vm0, %v276_v8, 0  ;;  %v423_v11 = vsel (!%p229_p8), %vm310_vm0, %v693_v9, 0  ;;  %s675_s30 = sshll.u32 (!%p229_p8), %s235_s29, 6  ;;  %vm297_vm1 = vcmask (!%p229_p8), 31744   ;;  %vm266_vm2 = vcmask (!%p229_p8), 27648  }
  0x1b   : > { %716 = vmatpush3.bf16.msra.mxu0 (!%p229_p8), %v312_v10  ;;  %726 = vmatpush3.bf16.msra.mxu1 (!%p229_p8), %v423_v11  ;;  %s237_s3 = scalar_lea.vmem (!%p229_p8), [#allocation2], %s675_s30  ;;  %p257_p9 = scmp.lt.s32.totalorder (!%p229_p8), %s816_s11, 1  ;;  %v826_v20 = vmov (!%p229_p8), 0.0   ;;  %vm590_vm3 = vcmask (!%p229_p8), 1040384   ;;  %vm593_vm4 = vcmask (!%p229_p8), 1042432  }
  0x1c   : > { %v778_v12 = vld [vmem:[%s237_s3] sm:$0xff] (!%p229_p8)   ;;  %v780_v14 = vld [vmem:[%s237_s3 + $0x8] sm:$0xff] (!%p229_p8)   ;;  %v782_v16 = vld [vmem:[%s237_s3 + $0x10] sm:$0xff] (!%p229_p8)  }
  0x1d   : > { %v779_v13 = vld [vmem:[%s237_s3 + $0x20] sm:$0xff] (!%p229_p8)   ;;  %717 = vmatprep.mubr.msk.bf16.mxu0 (!%p229_p8), %vm297_vm1, %v778_v12  ;;  %v781_v15 = vld [vmem:[%s237_s3 + $0x28] sm:$0xff] (!%p229_p8)   ;;  %v783_v17 = vld [vmem:[%s237_s3 + $0x30] sm:$0xff] (!%p229_p8)  }
  0x1e   : > { %727 = vmatprep.mubr.msk.bf16.mxu1 (!%p229_p8), %vm297_vm1, %v779_v13  ;;  %718 = vmatmul.mubr.msk.bf16.vlgmr.msra.gmra.mrb[0].mxu0 (!%p229_p8), %vm297_vm1, %v780_v14  ;;  %v784_v18 = vld [vmem:[%s237_s3 + $0x18] sm:$0xff] (!%p229_p8)  }
  0x1f   : > { %728 = vmatmul.mubr.msk.bf16.vlgmr.msra.gmra.mrb[0].mxu1 (!%p229_p8), %vm297_vm1, %v781_v15  ;;  %721 = vmatprep.mubr.msk.bf16.mxu0 (!%p229_p8), %vm297_vm1, %v782_v16  ;;  %v785_v19 = vld [vmem:[%s237_s3 + $0x38] sm:$0xff] (!%p229_p8)  }
  0x20   : > { %731 = vmatprep.mubr.msk.bf16.mxu1 (!%p229_p8), %vm297_vm1, %v783_v17 }
  0x21   : > { %s976_s11 = smov (!%p257_p9, %s816_s11), 1 }
  0x22   : > { %s676_s4 = sshll.u32 %s976_s11, 2 }
  0x23   : > { %s911_s7 = scalar_lea.vmem %s968_s2, %s676_s4 }
  0x24   : > { %267 = vst.msk [vmem:[%s911_s7] sm:$0xf] %vm266_vm2, %v826_v20 }
  0x26   : > { %722 = vmatmul.mubr.msk.bf16.gmra.mrb[4].mxu0 %vm297_vm1, %v784_v18 }
  0x27   : > { %732 = vmatmul.mubr.msk.bf16.gmra.mrb[4].mxu1 %vm297_vm1, %v785_v19 }
  0xf1   : > { %v719_v21 = vpop.f32.mrb[0].mxu0 }
  0xf2   : > { %v729_v22 = vpop.f32.mrb[0].mxu1  ;;  %v348_v23 = vpop.f32.mrb[1].mxu0  ;;  %v493_v30 = vsel %vm297_vm1, %v719_v21, 0.0  ;;  %v534_v31 = vmul.f32 %v719_v21, %v719_v21 }
  0xf3   : > { %v532_v24 = vmul.f32 %v348_v23, %v348_v23  ;;  %v459_v25 = vpop.f32.mrb[1].mxu1  ;;  %v720_v26 = vpop.f32.mrb[2].mxu0  ;;  %v514_v32 = vsel %vm297_vm1, %v729_v22, 0.0  ;;  %v563_v33 = vmul.f32 %v729_v22, %v729_v22  ;;  %v490_v35 = vsel %vm297_vm1, %v348_v23, 0.0 }
  0xf4   : > { %v561_v27 = vmul.f32 %v459_v25, %v459_v25  ;;  %v730_v28 = vpop.f32.mrb[2].mxu1  ;;  %v351_v29 = vpop.f32.mrb[3].mxu0  ;;  %v511_v36 = vsel %vm297_vm1, %v459_v25, 0.0  ;;  %v535_v44 = vmul.f32 %v720_v26, %v720_v26  ;;  %v543_v52 = vsel %vm297_vm1, %v534_v31, 0.0 }
  0xf5   : > { %v462_v34 = vpop.f32.mrb[3].mxu1  ;;  %v491_v37 = vsel %vm297_vm1, %v351_v29, 0.0  ;;  %v533_v38 = vmul.f32 %v351_v29, %v351_v29  ;;  %v540_v39 = vsel %vm297_vm1, %v532_v24, 0.0  ;;  %v564_v47 = vmul.f32 %v730_v28, %v730_v28 }
  0xf6   : > { %v492_v40 = vadd.f32 %v491_v37, %v490_v35  ;;  %v512_v41 = vsel %vm297_vm1, %v462_v34, 0.0  ;;  %v562_v42 = vmul.f32 %v462_v34, %v462_v34  ;;  %v569_v43 = vsel %vm297_vm1, %v561_v27, 0.0 }
  0xf7   : > { %v541_v45 = vsel %vm297_vm1, %v533_v38, 0.0  ;;  %v513_v46 = vadd.f32 %v512_v41, %v511_v36  ;;  %v495_v53 = vsel %vm297_vm1, %v720_v26, 0.0  ;;  %v572_v58 = vsel %vm297_vm1, %v563_v33, 0.0 }
  0xf8   : > { %v494_v48 = vadd.f32 %v493_v30, %v492_v40  ;;  %v542_v49 = vadd.f32 %v541_v45, %v540_v39  ;;  %v570_v50 = vsel %vm297_vm1, %v562_v42, 0.0  ;;  %v516_v59 = vsel %vm297_vm1, %v730_v28, 0.0 }
  0xf9   : > { %v723_v51 = vpop.f32.mrb[4].mxu0  ;;  %v515_v54 = vadd.f32 %v514_v32, %v513_v46  ;;  %v571_v55 = vadd.f32 %v570_v50, %v569_v43  ;;  %v545_v0 = vsel %vm297_vm1, %v535_v44, 0.0  ;;  %v574_v6 = vsel %vm297_vm1, %v564_v47, 0.0 }
  0xfa   : > { %v733_v56 = vpop.f32.mrb[4].mxu1  ;;  %v364_v57 = vpop.f32.mrb[5].mxu0  ;;  %v544_v60 = vadd.f32 %v543_v52, %v542_v49  ;;  %v496_v61 = vadd.f32 %v495_v53, %v494_v48  ;;  %v501_v17 = vsel %vm297_vm1, %v723_v51, 0.0  ;;  %v538_v20 = vmul.f32 %v723_v51, %v723_v51 }
  0xfb   : > { %v475_v62 = vpop.f32.mrb[5].mxu1  ;;  %v724_v63 = vpop.f32.mrb[6].mxu0  ;;  %v573_v1 = vadd.f32 %v572_v58, %v571_v55  ;;  %v497_v2 = vsel %vm297_vm1, %v364_v57, 0.0  ;;  %v536_v3 = vmul.f32 %v364_v57, %v364_v57  ;;  %v517_v9 = vadd.f32 %v516_v59, %v515_v54 }
  0xfc   : > { %v734_v4 = vpop.f32.mrb[6].mxu1  ;;  %v367_v5 = vpop.f32.mrb[7].mxu0  ;;  %v498_v7 = vadd.f32 %v497_v2, %v496_v61  ;;  %v546_v8 = vadd.f32 %v545_v0, %v544_v60  ;;  %v518_v12 = vsel %vm297_vm1, %v475_v62, 0.0  ;;  %v565_v13 = vmul.f32 %v475_v62, %v475_v62 }
  0xfd   : > { %v478_v10 = vpop.f32.mrb[7].mxu1  ;;  %v547_v11 = vsel %vm297_vm1, %v536_v3, 0.0  ;;  %v575_v14 = vadd.f32 %v574_v6, %v573_v1  ;;  %v519_v16 = vadd.f32 %v518_v12, %v517_v9  ;;  %v499_v19 = vsel %vm297_vm1, %v367_v5, 0.0 }
  0xfe   : > { %v548_v15 = vadd.f32 %v547_v11, %v546_v8  ;;  %v576_v18 = vsel %vm297_vm1, %v565_v13, 0.0  ;;  %v500_v22 = vadd.f32 %v499_v19, %v498_v7  ;;  %v537_v23 = vmul.f32 %v367_v5, %v367_v5 }
  0xff   : > { %v577_v21 = vadd.f32 %v576_v18, %v575_v14  ;;  %v522_v24 = vsel %vm297_vm1, %v733_v56, 0.0  ;;  %v567_v25 = vmul.f32 %v733_v56, %v733_v56  ;;  %v520_v26 = vsel %vm297_vm1, %v478_v10, 0.0 }
 0x100   : > { %v566_v27 = vmul.f32 %v478_v10, %v478_v10  ;;  %v539_v28 = vmul.f32 %v724_v63, %v724_v63  ;;  %v502_v29 = vadd.f32 %v501_v17, %v500_v22  ;;  %v549_v30 = vsel %vm297_vm1, %v537_v23, 0.0  ;;  %v595_v10 = vld [vmem:[%s911_s7] sm:$0xf] }
 0x101   : > { %v521_v31 = vadd.f32 %v520_v26, %v519_v16  ;;  %v503_v32 = vsel %vm297_vm1, %v724_v63, 0.0  ;;  %v568_v33 = vmul.f32 %v734_v4, %v734_v4  ;;  %v550_v34 = vadd.f32 %v549_v30, %v548_v15 }
 0x102   : > { %v578_v35 = vsel %vm297_vm1, %v566_v27, 0.0  ;;  %v551_v36 = vsel %vm297_vm1, %v538_v20, 0.0  ;;  %v504_v37 = vadd.f32 %v503_v32, %v502_v29  ;;  %v580_v40 = vsel %vm297_vm1, %v567_v25, 0.0 }
 0x103   : > { %v523_v38 = vadd.f32 %v522_v24, %v521_v31  ;;  %v579_v39 = vadd.f32 %v578_v35, %v577_v21  ;;  %v524_v41 = vsel %vm297_vm1, %v734_v4, 0.0  ;;  %v552_v42 = vadd.f32 %v551_v36, %v550_v34 }
 0x104   : > { %v553_v43 = vsel %vm297_vm1, %v539_v28, 0.0  ;;  %v505_v44 = vrot.slane %v504_v37, 4  ;;  %v582_v47 = vsel %vm297_vm1, %v568_v33, 0.0 }
 0x105   : > { %v525_v45 = vadd.f32 %v524_v41, %v523_v38  ;;  %v581_v46 = vadd.f32 %v580_v40, %v579_v39  ;;  %v554_v48 = vadd.f32 %v553_v43, %v552_v42 }
 0x106   : > { %v506_v49 = vadd.f32 %v505_v44, %v504_v37 }
 0x107   : > { %v526_v50 = vrot.slane %v525_v45, 4  ;;  %v583_v51 = vadd.f32 %v582_v47, %v581_v46  ;;  %v555_v52 = vrot.slane %v554_v48, 4 }
 0x108   : > { %v507_v53 = vrot.slane %v506_v49, 2 }
 0x109   : > { %v527_v54 = vadd.f32 %v526_v50, %v525_v45  ;;  %v584_v55 = vrot.slane %v583_v51, 4  ;;  %v556_v56 = vadd.f32 %v555_v52, %v554_v48 }
 0x10a   : > { %v508_v57 = vadd.f32 %v507_v53, %v506_v49 }
 0x10b   : > { %v528_v58 = vrot.slane %v527_v54, 2  ;;  %v585_v59 = vadd.f32 %v584_v55, %v583_v51  ;;  %v557_v60 = vrot.slane %v556_v56, 2 }
 0x10c   : > { %v509_v61 = vrot.slane %v508_v57, 1 }
 0x10d   : > { %v529_v62 = vadd.f32 %v528_v58, %v527_v54  ;;  %v586_v63 = vrot.slane %v585_v59, 2  ;;  %v558_v0 = vadd.f32 %v557_v60, %v556_v56 }
 0x10e   : > { %v510_v1 = vadd.f32 %v509_v61, %v508_v57 }
 0x10f   : > { %v530_v2 = vrot.slane %v529_v62, 1  ;;  %v587_v3 = vadd.f32 %v586_v63, %v585_v59  ;;  %v559_v4 = vrot.slane %v558_v0, 1 }
 0x111   : > { %v531_v5 = vadd.f32 %v530_v2, %v529_v62  ;;  %v588_v6 = vrot.slane %v587_v3, 1  ;;  %v560_v7 = vadd.f32 %v559_v4, %v558_v0 }
 0x113   : > { %v589_v8 = vadd.f32 %v588_v6, %v587_v3  ;;  %v591_v9 = vsel %vm590_vm3, %v510_v1, %v531_v5 }
 0x114   : > { %v592_v11 = vsel %vm310_vm0, %v591_v9, %v560_v7 }
 0x115   : > { %v594_v12 = vsel %vm593_vm4, %v592_v11, %v589_v8 }
 0x116   : > { %v596_v13 = vadd.f32 %v595_v10, %v594_v12 }
 0x118   : > { %598 = vst.msk [vmem:[%s911_s7] sm:$0xf] %vm266_vm2, %v596_v13 }
 0x119 PF: > { %s12_s13 = sadd.s32 1, %s824_s13   ;;  %s969_s9 = smov %s812_s10 }
 0x11a   : > { %p9_p10 = scmp.ge.s32.totalorder %s12_s13, 4   ;;  %s970_s10 = smov %s877_s17 }
 0x11b   : > { %s971_s11 = smov %s820_s12  ;;  %s972_s12 = smov %s974_s14 }
 0x11c   :  { %11 = sbr.rel (!%p9_p10) target bundleno = 3 (0x3), region = 110 }

// kernel: factorized_reduce.3
= control target key start
LH: loop header
LB: loop body
LE: loop exit
PB: predicated region body
PF: predicated region fallthrough
CT: control target
= control target key end

     0   :  { %s881_s12 = smov 0   ;;  %s883_s13 = smov 0   ;;  %s1017_s0 = inlined_call_operand.vmem [shape: bf16[2,128,4], index: 0, kind: input, shape index: {}]   ;;  %s1018_s1 = inlined_call_operand.vmem [shape: bf16[2,4,4], index: 1, kind: input, shape index: {}]   ;;  %s1019_s2 = inlined_call_operand.vmem [shape: f32[4,4], index: 2, kind: input, shape index: {}]   ;;  %s1020_s3 = inlined_call_operand.vmem [shape: f32[2,128,4], index: 3, kind: output, shape index: {}]  }
   0x1   :  { %s885_s14 = smov 0  }
   0x2 LB: > { %s719_s15 = sadd.s32 4294967295, %s859_s14   ;;  %s898_s16 = sadd.s32 1, %s859_s14   ;;  %s859_s14 = sphi %s885_s14, %s1024_s14   ;;  %s855_s13 = sphi %s883_s13, %s1023_s13   ;;  %s851_s12 = sphi %s881_s12, %s1022_s12  }
   0x3   : > { %s17_s17 = ssub.s32 %s859_s14, %s898_s16  ;;  %s20_s18 = sadd.s32 1, %s855_s13 }
   0x4   : > { %p18_p0 = scmp.eq.s32.totalorder %s17_s17, 0  ;;  %p27_p1 = scmp.ne.s32.totalorder %s855_s13, %s851_s12 }
   0x5   : > { %p28_p2 = scmp.eq.s32.totalorder %s859_s14, 0  ;;  %p99_p3 = scmp.eq.s32.totalorder %s719_s15, 1 }
   0x6   : > { %s909_s19 = scalar_select %p18_p0, %s855_s13, %s20_s18  }
   0x7   : > { %p29_p4 = por %p28_p2, %p27_p1  ;;  %p911_p5 = por %p99_p3, %p27_p1 }
   0x8   : > { %p722_p6 = scmp.ge.s32.totalorder %s859_s14, 2 }
   0xa   : > { %127 = sbr.rel (%p722_p6) target bundleno = 25 (0x19), region = 24 }
  0x11   : > { %130 = sbr.rel (!%p29_p4) target bundleno = 25 (0x19), region = 28  ;;  %s132_s21 = sand.u32 (%p29_p4), 1, %s855_s13  }
  0x12   : > { %s771_s22 = sshll.u32 (%p29_p4), %s859_s14, 5  ;;  %s723_s23 = sshll.u32 (%p29_p4), %s132_s21, 6 }
  0x13   : > { %s137_s26 = scalar_lea.vmem (%p29_p4), %s1017_s0, %s771_s22  ;;  %s134_s27 = scalar_lea.vmem (%p29_p4), [#allocation2], %s723_s23 }
  0x14   : > { %v153_v0 = vld [vmem:[%s137_s26] sm:$0xff] (%p29_p4)   ;;  %v157_v1 = vld [vmem:[%s137_s26 + $0x8] sm:$0xff] (%p29_p4)   ;;  %v161_v2 = vld [vmem:[%s137_s26 + $0x10] sm:$0xff] (%p29_p4)  }
  0x15   : > { %154 = vst [vmem:[%s134_s27] sm:$0xff] (%p29_p4), %v153_v0   ;;  %158 = vst [vmem:[%s134_s27 + $0x8] sm:$0xff] (%p29_p4), %v157_v1   ;;  %v165_v3 = vld [vmem:[%s137_s26 + $0x18] sm:$0xff] (%p29_p4)   ;;  %v169_v4 = vld [vmem:[%s137_s26 + $0x40] sm:$0xff] (%p29_p4)  }
  0x16   : > { %162 = vst [vmem:[%s134_s27 + $0x10] sm:$0xff] (%p29_p4), %v161_v2   ;;  %v173_v5 = vld [vmem:[%s137_s26 + $0x48] sm:$0xff] (%p29_p4)   ;;  %166 = vst [vmem:[%s134_s27 + $0x18] sm:$0xff] (%p29_p4), %v165_v3   ;;  %v177_v6 = vld [vmem:[%s137_s26 + $0x50] sm:$0xff] (%p29_p4)  }
  0x17   : > { %170 = vst [vmem:[%s134_s27 + $0x20] sm:$0xff] (%p29_p4), %v169_v4   ;;  %174 = vst [vmem:[%s134_s27 + $0x28] sm:$0xff] (%p29_p4), %v173_v5   ;;  %v181_v7 = vld [vmem:[%s137_s26 + $0x58] sm:$0xff] (%p29_p4)  }
  0x18   : > { %178 = vst [vmem:[%s134_s27 + $0x30] sm:$0xff] %v177_v6   ;;  %182 = vst [vmem:[%s134_s27 + $0x38] sm:$0xff] %v181_v7  }
  0x19 PF: > { %p726_p7 = scmp.ge.s32.totalorder %s859_s14, 1  ;;  %p238_p8 = scmp.lt.s32.totalorder %s859_s14, 3 }
  0x1b   : > { %p239_p9 = pnand %p726_p7, %p238_p8 }
  0x1c   : > { %v278_v8 = vld [vmem:[%s1018_s1] sm:$0x3] (!%p239_p9)  ;;  %vm312_vm0 = vcmask (!%p239_p9), 1041408   ;;  %v745_v9 = vld [vmem:[%s1018_s1 + $0x2] sm:$0x3] (!%p239_p9)  ;;  %s245_s5 = sand.u32 (!%p239_p9), 1, %s851_s12  }
  0x1d   : > { %242 = sbr.rel (%p239_p9) target bundleno = 270 (0x10e), region = 69  ;;  %803 = vmatprep.subr.msk.bf16.mxu0 (!%p239_p9), %vm312_vm0, %v278_v8  ;;  %804 = vmatprep.subr.msk.bf16.mxu1 (!%p239_p9), %vm312_vm0, %v745_v9  ;;  %v314_v10 = vsel (!%p239_p9), %vm312_vm0, %v278_v8, 0  ;;  %v425_v11 = vsel (!%p239_p9), %vm312_vm0, %v745_v9, 0  ;;  %s727_s6 = sshll.u32 (!%p239_p9), %s245_s5, 6  ;;  %vm299_vm1 = vcmask (!%p239_p9), 31744  }
  0x1e   : > { %784 = vmatpush3.bf16.msra.mxu0 (!%p239_p9), %v314_v10  ;;  %794 = vmatpush3.bf16.msra.mxu1 (!%p239_p9), %v425_v11  ;;  %s247_s7 = scalar_lea.vmem (!%p239_p9), [#allocation2], %s727_s6  ;;  %v754_v20 = vld [vmem:[%s1019_s2] ss:$0 sm:$0xff] (!%p239_p9)  ;;  %s728_s10 = sshll.u32 (!%p239_p9), %s245_s5, 7  ;;  %v756_v21 = vld [vmem:[%s1019_s2 + $0x2] ss:$0 sm:$0xff] (!%p239_p9) }
  0x1f   : > { %v829_v12 = vld [vmem:[%s247_s7] sm:$0xff] (!%p239_p9)   ;;  %v831_v14 = vld [vmem:[%s247_s7 + $0x8] sm:$0xff] (!%p239_p9)   ;;  %v833_v16 = vld [vmem:[%s247_s7 + $0x10] sm:$0xff] (!%p239_p9)   ;;  %s950_s23 = scalar_lea.vmem (!%p239_p9), [#allocation3], %s728_s10 }
  0x20   : > { %v830_v13 = vld [vmem:[%s247_s7 + $0x20] sm:$0xff] (!%p239_p9)   ;;  %785 = vmatprep.mubr.msk.bf16.mxu0 (!%p239_p9), %vm299_vm1, %v829_v12  ;;  %v832_v15 = vld [vmem:[%s247_s7 + $0x28] sm:$0xff] (!%p239_p9)   ;;  %v834_v17 = vld [vmem:[%s247_s7 + $0x30] sm:$0xff] (!%p239_p9)  }
  0x21   : > { %795 = vmatprep.mubr.msk.bf16.mxu1 (!%p239_p9), %vm299_vm1, %v830_v13  ;;  %786 = vmatmul.mubr.msk.bf16.vlgmr.msra.gmra.mrb[0].mxu0 (!%p239_p9), %vm299_vm1, %v831_v14  ;;  %v835_v18 = vld [vmem:[%s247_s7 + $0x18] sm:$0xff] (!%p239_p9)   ;;  %v755_v23 = vld [vmem:[%s1019_s2 + $0x1] ss:$0 sm:$0xff] (!%p239_p9)  ;;  %v757_v26 = vld [vmem:[%s1019_s2 + $0x3] ss:$0 sm:$0xff] (!%p239_p9) }
  0x22   : > { %796 = vmatmul.mubr.msk.bf16.vlgmr.msra.gmra.mrb[0].mxu1 (!%p239_p9), %vm299_vm1, %v832_v15  ;;  %789 = vmatprep.mubr.msk.bf16.mxu0 (!%p239_p9), %vm299_vm1, %v833_v16  ;;  %v836_v19 = vld [vmem:[%s247_s7 + $0x38] sm:$0xff] (!%p239_p9)  }
  0x23   : > { %799 = vmatprep.mubr.msk.bf16.mxu1 (!%p239_p9), %vm299_vm1, %v834_v17 }
  0x24   : > { %s772_s24 = sshll.u32 (%p911_p5), %s719_s15, 6 }
  0x25   : > { %s570_s20 = scalar_lea.vmem (%p911_p5), %s1020_s3, %s772_s24 }
  0x29   : > { %790 = vmatmul.mubr.msk.bf16.gmra.mrb[4].mxu0 %vm299_vm1, %v835_v18 }
  0x2a   : > { %800 = vmatmul.mubr.msk.bf16.gmra.mrb[4].mxu1 %vm299_vm1, %v836_v19 }
  0xf4   : > { %v787_v22 = vpop.f32.mrb[0].mxu0 }
  0xf5   : > { %v499_v24 = vmul.f32 %v787_v22, %v754_v20  ;;  %v797_v25 = vpop.f32.mrb[0].mxu1  ;;  %v350_v27 = vpop.f32.mrb[1].mxu0 }
  0xf6   : > { %v533_v28 = vmul.f32 %v797_v25, %v756_v21  ;;  %v497_v29 = vmul.f32 %v754_v20, %v350_v27  ;;  %v461_v30 = vpop.f32.mrb[1].mxu1  ;;  %v788_v31 = vpop.f32.mrb[2].mxu0 }
  0xf7   : > { %v512_v32 = vadd.f32 %v755_v23, %v499_v24  ;;  %v531_v33 = vmul.f32 %v756_v21, %v461_v30  ;;  %v500_v34 = vmul.f32 %v788_v31, %v754_v20  ;;  %v798_v35 = vpop.f32.mrb[2].mxu1  ;;  %v353_v36 = vpop.f32.mrb[3].mxu0 }
  0xf8   : > { %v546_v37 = vadd.f32 %v757_v26, %v533_v28  ;;  %v510_v38 = vadd.f32 %v755_v23, %v497_v29  ;;  %v534_v39 = vmul.f32 %v798_v35, %v756_v21  ;;  %v498_v40 = vmul.f32 %v754_v20, %v353_v36  ;;  %v464_v41 = vpop.f32.mrb[3].mxu1 }
  0xf9   : > { %520 = vst.msk [vmem:[%s950_s23 + $0x10] sm:$0xff] %vm299_vm1, %v512_v32  ;;  %v544_v42 = vadd.f32 %v757_v26, %v531_v33  ;;  %v513_v43 = vadd.f32 %v755_v23, %v500_v34  ;;  %v532_v44 = vmul.f32 %v756_v21, %v464_v41 }
  0xfa   : > { %760 = vst.msk [vmem:[%s950_s23 + $0x50] sm:$0xff] %vm299_vm1, %v546_v37  ;;  %518 = vst.msk [vmem:[%s950_s23] sm:$0xff] %vm299_vm1, %v510_v38  ;;  %v547_v45 = vadd.f32 %v757_v26, %v534_v39  ;;  %v511_v46 = vadd.f32 %v755_v23, %v498_v40 }
  0xfb   : > { %758 = vst.msk [vmem:[%s950_s23 + $0x40] sm:$0xff] %vm299_vm1, %v544_v42  ;;  %521 = vst.msk [vmem:[%s950_s23 + $0x18] sm:$0xff] %vm299_vm1, %v513_v43  ;;  %v545_v47 = vadd.f32 %v757_v26, %v532_v44 }
  0xfc   : > { %761 = vst.msk [vmem:[%s950_s23 + $0x58] sm:$0xff] %vm299_vm1, %v547_v45  ;;  %519 = vst.msk [vmem:[%s950_s23 + $0x8] sm:$0xff] %vm299_vm1, %v511_v46  ;;  %v791_v48 = vpop.f32.mrb[4].mxu0 }
  0xfd   : > { %759 = vst.msk [vmem:[%s950_s23 + $0x48] sm:$0xff] %vm299_vm1, %v545_v47  ;;  %v503_v49 = vmul.f32 %v791_v48, %v754_v20  ;;  %v801_v50 = vpop.f32.mrb[4].mxu1  ;;  %v366_v51 = vpop.f32.mrb[5].mxu0 }
  0xfe   : > { %v537_v52 = vmul.f32 %v801_v50, %v756_v21  ;;  %v501_v53 = vmul.f32 %v754_v20, %v366_v51  ;;  %v477_v54 = vpop.f32.mrb[5].mxu1  ;;  %v792_v55 = vpop.f32.mrb[6].mxu0 }
  0xff   : > { %v516_v56 = vadd.f32 %v755_v23, %v503_v49  ;;  %v535_v57 = vmul.f32 %v756_v21, %v477_v54  ;;  %v504_v58 = vmul.f32 %v792_v55, %v754_v20  ;;  %v802_v59 = vpop.f32.mrb[6].mxu1  ;;  %v369_v60 = vpop.f32.mrb[7].mxu0  ;;  %567 = sbr.rel (!%p911_p5) target bundleno = 270 (0x10e), region = 77 }
 0x100   : > { %v550_v61 = vadd.f32 %v757_v26, %v537_v52  ;;  %v514_v62 = vadd.f32 %v755_v23, %v501_v53  ;;  %v538_v63 = vmul.f32 %v802_v59, %v756_v21  ;;  %v502_v0 = vmul.f32 %v754_v20, %v369_v60  ;;  %v480_v1 = vpop.f32.mrb[7].mxu1  ;;  %v632_v10 = vld [vmem:[%s950_s23 + $0x10] sm:$0xff] (%p911_p5) }
 0x101   : > { %524 = vst.msk [vmem:[%s950_s23 + $0x30] sm:$0xff] %vm299_vm1, %v516_v56  ;;  %v548_v2 = vadd.f32 %v757_v26, %v535_v57  ;;  %v517_v3 = vadd.f32 %v755_v23, %v504_v58  ;;  %v536_v4 = vmul.f32 %v756_v21, %v480_v1  ;;  %v628_v8 = vld [vmem:[%s950_s23] sm:$0xff] (%p911_p5)  ;;  %633 = vst [vmem:[%s570_s20 + $0x10] sm:$0xff] (%p911_p5), %v632_v10  ;;  %v648_v18 = vld [vmem:[%s950_s23 + $0x50] sm:$0xff] (%p911_p5) }
 0x102   : > { %764 = vst.msk [vmem:[%s950_s23 + $0x70] sm:$0xff] %vm299_vm1, %v550_v61  ;;  %522 = vst.msk [vmem:[%s950_s23 + $0x20] sm:$0xff] %vm299_vm1, %v514_v62  ;;  %v551_v5 = vadd.f32 %v757_v26, %v538_v63  ;;  %v515_v6 = vadd.f32 %v755_v23, %v502_v0  ;;  %v634_v11 = vld [vmem:[%s950_s23 + $0x18] sm:$0xff] (%p911_p5)  ;;  %v644_v16 = vld [vmem:[%s950_s23 + $0x40] sm:$0xff] (%p911_p5) }
 0x103   : > { %762 = vst.msk [vmem:[%s950_s23 + $0x60] sm:$0xff] %vm299_vm1, %v548_v2  ;;  %525 = vst.msk [vmem:[%s950_s23 + $0x38] sm:$0xff] %vm299_vm1, %v517_v3  ;;  %v549_v7 = vadd.f32 %v757_v26, %v536_v4  ;;  %v630_v9 = vld [vmem:[%s950_s23 + $0x8] sm:$0xff] (%p911_p5)  ;;  %v650_v19 = vld [vmem:[%s950_s23 + $0x58] sm:$0xff] (%p911_p5) }
 0x104   : > { %765 = vst.msk [vmem:[%s950_s23 + $0x78] sm:$0xff] %vm299_vm1, %v551_v5  ;;  %523 = vst.msk [vmem:[%s950_s23 + $0x28] sm:$0xff] %vm299_vm1, %v515_v6  ;;  %v646_v17 = vld [vmem:[%s950_s23 + $0x48] sm:$0xff] (%p911_p5) }
 0x105   : > { %763 = vst.msk [vmem:[%s950_s23 + $0x68] sm:$0xff] %vm299_vm1, %v549_v7  ;;  %629 = vst [vmem:[%s570_s20] sm:$0xff] (%p911_p5), %v628_v8 }
 0x106   : > { %631 = vst [vmem:[%s570_s20 + $0x8] sm:$0xff] %v630_v9  ;;  %635 = vst [vmem:[%s570_s20 + $0x18] sm:$0xff] %v634_v11 }
 0x107   : > { %645 = vst [vmem:[%s570_s20 + $0x80] sm:$0xff] %v644_v16  ;;  %647 = vst [vmem:[%s570_s20 + $0x88] sm:$0xff] %v646_v17 }
 0x108   : > { %v640_v14 = vld [vmem:[%s950_s23 + $0x30] sm:$0xff]  ;;  %649 = vst [vmem:[%s570_s20 + $0x90] sm:$0xff] %v648_v18  ;;  %651 = vst [vmem:[%s570_s20 + $0x98] sm:$0xff] %v650_v19 }
 0x109   : > { %v636_v12 = vld [vmem:[%s950_s23 + $0x20] sm:$0xff]  ;;  %641 = vst [vmem:[%s570_s20 + $0x30] sm:$0xff] %v640_v14  ;;  %v656_v22 = vld [vmem:[%s950_s23 + $0x70] sm:$0xff] }
 0x10a   : > { %637 = vst [vmem:[%s570_s20 + $0x20] sm:$0xff] %v636_v12  ;;  %v642_v15 = vld [vmem:[%s950_s23 + $0x38] sm:$0xff]  ;;  %v652_v20 = vld [vmem:[%s950_s23 + $0x60] sm:$0xff]  ;;  %657 = vst [vmem:[%s570_s20 + $0xb0] sm:$0xff] %v656_v22 }
 0x10b   : > { %v638_v13 = vld [vmem:[%s950_s23 + $0x28] sm:$0xff]  ;;  %643 = vst [vmem:[%s570_s20 + $0x38] sm:$0xff] %v642_v15  ;;  %653 = vst [vmem:[%s570_s20 + $0xa0] sm:$0xff] %v652_v20  ;;  %v658_v23 = vld [vmem:[%s950_s23 + $0x78] sm:$0xff] }
 0x10c   : > { %639 = vst [vmem:[%s570_s20 + $0x28] sm:$0xff] %v638_v13  ;;  %v654_v21 = vld [vmem:[%s950_s23 + $0x68] sm:$0xff]  ;;  %659 = vst [vmem:[%s570_s20 + $0xb8] sm:$0xff] %v658_v23 }
 0x10d   : > { %655 = vst [vmem:[%s570_s20 + $0xa8] sm:$0xff] %v654_v21 }
 0x10e PF: > { %p10_p10 = scmp.ge.s32.totalorder %s898_s16, 4   ;;  %s1022_s12 = smov %s855_s13 }
 0x10f   : > { %s1023_s13 = smov %s909_s19  ;;  %s1024_s14 = smov %s898_s16 }
 0x110   :  { %12 = sbr.rel (!%p10_p10) target bundleno = 2 (0x2), region = 149 }

</bundles_post_ra>
